<compile_context>
chip_gen: v7x
topology: tpu7x:2x2x1
jax: 0.10.0
libtpu: 0.0.40
codegen_flags: <defaults>
</compile_context>

<pallas_src>
import functools

import jax
import jax.numpy as jnp
from jax.experimental import pallas as pl
from jax.experimental.pallas import tpu as pltpu

LANE = 128


def _conv_gelu_kernel(x_hbm, w_ref, b_ref, o_ref, xbuf, sem,
                      *, K, l_tile, l_in, n_t):
    # x_hbm : (groups, ic_pg, L_total)  raw HBM ref (pl.ANY), batch folded into time
    # w_ref : (1, K, oc_pg, ic_pg)      per-group tap-major weights (resident across t)
    # b_ref : (1, oc_pg, 1)             per-group bias
    # o_ref : (1, oc_pg, l_tile)        GELU(conv + b) for this (group, time tile)
    # xbuf  : (2, ic_pg, l_in)          double-buffered halo slab (l_in = l_tile + halo)
    # sem   : DMA semaphores (2,)
    g = pl.program_id(0)
    t = pl.program_id(1)
    slot = t % 2

    def tile_copy(tile_idx, s):
        start = pl.multiple_of(tile_idx * l_tile, LANE)
        return pltpu.make_async_copy(
            x_hbm.at[g, :, pl.ds(start, l_in)], xbuf.at[s], sem.at[s])

    # Prime the pipeline at the start of each group row (safe under megacore
    # sharding of the "groups" axis: every core's first t is 0).
    @pl.when(t == 0)
    def _():
        tile_copy(t, slot).start()

    # Wait for the current tile's slab.
    tile_copy(t, slot).wait()

    # Prefetch the next tile of this group row into the other slot.
    @pl.when(t + 1 < n_t)
    def _():
        tile_copy(t + 1, 1 - slot).start()

    # K-tap accumulation: acc[oc, l] = sum_j W[j] @ x[:, l + j]
    acc = jnp.dot(w_ref[0, 0], xbuf[slot, :, pl.ds(0, l_tile)],
                  preferred_element_type=jnp.float32)
    for j in range(1, K):
        acc = acc + jnp.dot(w_ref[0, j], xbuf[slot, :, pl.ds(j, l_tile)],
                            preferred_element_type=jnp.float32)
    acc = acc + b_ref[0].astype(jnp.float32)

    # exact (erf-based) GELU, matching torch.nn.GELU() default
    inv_sqrt2 = jnp.float32(0.7071067811865476)
    out = 0.5 * acc * (1.0 + jax.lax.erf(acc * inv_sqrt2))
    o_ref[0] = out.astype(o_ref.dtype)


def _vmem_capacity_bytes():
    try:
        info = pltpu.get_tpu_info()
        cap = getattr(info, "vmem_capacity_bytes", None)
        if cap:
            return int(cap)
    except Exception:
        pass
    return 64 * 1024 * 1024  # conservative (v7x per-TC) fallback


def position_embedding_forward(x, weight_v, weight_g, bias, *, groups, kernel_size):
    """x: (B, C_in, T) float32.  Returns (B, C_out, L_out), L_out = T + 2*(K//2) - K."""
    B, C_in, T = x.shape
    C_out = weight_v.shape[0]
    K = kernel_size
    ic_pg = C_in // groups
    oc_pg = C_out // groups
    pad = K // 2
    L_out = T + 2 * pad - K          # conv output length after [:, :, :-1]

    # weight_norm with dim=2: norm over dims (0, 1) per kernel tap
    norm = jnp.sqrt(jnp.sum(weight_v ** 2, axis=(0, 1), keepdims=True))
    weight = weight_g * weight_v / norm                       # (C_out, ic_pg, K)
    # (groups, K, oc_pg, ic_pg): one (oc_pg, ic_pg) matrix per tap
    w_k = weight.reshape(groups, oc_pg, ic_pg, K).transpose(0, 3, 1, 2)
    b_g = bias.reshape(groups, oc_pg, 1)

    # ---- fold batch into the time/lane axis -------------------------------
    # Each batch gets a lane-aligned segment holding its zero-padded input;
    # valid outputs of batch b only read inside batch b's segment, so a single
    # affine shift works across the whole folded axis.
    seg = pl.cdiv(T + 2 * pad, LANE) * LANE
    L_fold = B * seg
    halo = pl.cdiv(max(K - 1, 1), LANE) * LANE                # lane-aligned halo

    itemsize = jnp.dtype(x.dtype).itemsize

    # ---- generation-aware time-tile sizing --------------------------------
    vmem_cap = _vmem_capacity_bytes()                         # 64 MiB (v7x) / 128 MiB (v5e/v6e)
    tile_budget = int(vmem_cap * 0.45)
    fixed = 2 * K * oc_pg * ic_pg * itemsize + 2 * ic_pg * halo * itemsize
    per_lane = (2 * ic_pg + 2 * oc_pg) * itemsize             # db input + db output per lane
    avail = max(tile_budget - fixed, 0)
    l_tile = (avail // per_lane) // LANE * LANE
    l_tile = max(LANE, min(l_tile, 16 * 1024, pl.cdiv(L_fold, LANE) * LANE))
    n_t = pl.cdiv(L_fold, l_tile)
    L_padded = n_t * l_tile

    # Build the folded input (groups, ic_pg, L_padded + halo); this is the only
    # wrapper-side copy (~1x input size) — no K-fold im2col materialization.
    x_g = x.reshape(B, groups, ic_pg, T)
    x_seg = jnp.pad(x_g, ((0, 0), (0, 0), (0, 0), (pad, seg - pad - T)))
    x_fold = x_seg.transpose(1, 2, 0, 3).reshape(groups, ic_pg, L_fold)
    x_fold = jnp.pad(x_fold, ((0, 0), (0, 0), (0, L_padded - L_fold + halo)))

    kernel = functools.partial(_conv_gelu_kernel, K=K, l_tile=l_tile,
                               l_in=l_tile + halo, n_t=n_t)

    out = pl.pallas_call(
        kernel,
        out_shape=jax.ShapeDtypeStruct((groups, oc_pg, L_padded), x.dtype),
        grid=(groups, n_t),
        in_specs=[
            pl.BlockSpec(memory_space=pl.ANY),                 # raw HBM, manual halo DMA
            # weight / bias block index ignores t -> per-group tile stays resident
            pl.BlockSpec((1, K, oc_pg, ic_pg), lambda g, t: (g, 0, 0, 0)),
            pl.BlockSpec((1, oc_pg, 1), lambda g, t: (g, 0, 0)),
        ],
        out_specs=pl.BlockSpec((1, oc_pg, l_tile), lambda g, t: (g, 0, t)),
        scratch_shapes=[
            pltpu.VMEM((2, ic_pg, l_tile + halo), x.dtype),
            pltpu.SemaphoreType.DMA((2,)),
        ],
        compiler_params=pltpu.CompilerParams(
            dimension_semantics=("parallel", "arbitrary"),
            vmem_limit_bytes=int(vmem_cap * 0.75)),
    )(x_fold, w_k, b_g)

    # Unfold: (groups, oc_pg, B*seg) -> (B, C_out, L_out)
    out = out[..., :L_fold].reshape(groups, oc_pg, B, seg)[..., :L_out]
    return out.transpose(2, 0, 1, 3).reshape(B, C_out, L_out)


def _reference(x, weight_v, weight_g, bias, *, groups, kernel_size):
    """Pure-JAX reference mirroring the PyTorch forward."""
    norm = jnp.sqrt(jnp.sum(weight_v ** 2, axis=(0, 1), keepdims=True))
    weight = weight_g * weight_v / norm
    pad = kernel_size // 2
    y = jax.lax.conv_general_dilated(
        x, weight, window_strides=(1,), padding=[(pad, pad)],
        feature_group_count=groups,
        dimension_numbers=("NCH", "OIH", "NCH"))
    y = y + bias[None, :, None]
    y = y[:, :, :-1]
    return jax.nn.gelu(y, approximate=False)


if __name__ == "__main__":
    # small shapes consistent with the module: B=2, channels=32, T=16,
    # kernel_size=4 (even, as in distilhubert), groups=2
    B, C, T = 2, 32, 16
    K, groups = 4, 2

    key = jax.random.PRNGKey(0)
    k1, k2, k3, k4 = jax.random.split(key, 4)
    x = jax.random.normal(k1, (B, C, T), jnp.float32)
    weight_v = jax.random.normal(k2, (C, C // groups, K), jnp.float32) * 0.1
    weight_g = 1.0 + 0.5 * jax.random.normal(k3, (1, 1, K), jnp.float32)
    bias = jax.random.normal(k4, (C,), jnp.float32) * 0.1

    out = position_embedding_forward(x, weight_v, weight_g, bias,
                                     groups=groups, kernel_size=K)
    out = jax.block_until_ready(out)

    ref = _reference(x, weight_v, weight_g, bias, groups=groups, kernel_size=K)
    assert out.shape == (B, C, T), out.shape
    max_err = float(jnp.max(jnp.abs(out - ref)))
    assert jnp.allclose(out, ref, atol=1e-5, rtol=1e-5), max_err
    print("KERNEL_OK")
</pallas_src>

<mosaic_0001>
module attributes {stable_mosaic.version = 11 : i64} {
  func.func @_conv_gelu_kernel(%arg0: i32, %arg1: i32, %arg2: memref<2x16x384xf32, #tpu.memory_space<any>>, %arg3: memref<1x4x16x16xf32, #tpu.memory_space<vmem>>, %arg4: memref<1x16x1xf32, #tpu.memory_space<vmem>>, %arg5: memref<1x16x256xf32, #tpu.memory_space<vmem>>, %arg6: memref<2x16x384xf32, #tpu.memory_space<vmem>>, %arg7: memref<2x!tpu.dma_semaphore, #tpu.memory_space<semaphore_mem>>) attributes {dimension_semantics = [#tpu.dimension_semantics<parallel>, #tpu.dimension_semantics<arbitrary>], iteration_bounds = array<i64: 2, 1>, scalar_prefetch = 0 : i64, scratch_operands = 2 : i64, tpu.core_type = #tpu.core_type<tc>, window_params = [{}, {transform_indices = @transform_1, window_bounds = array<i64: 1, 4, 16, 16>}, {transform_indices = @transform_2, window_bounds = array<i64: 1, 16, 1>}, {transform_indices = @transform_3, window_bounds = array<i64: 1, 16, 256>}]} {
    %c2_i32 = arith.constant 2 : i32
    %c0_i32 = arith.constant 0 : i32
    %0 = arith.cmpi eq, %c2_i32, %c0_i32 : i32
    %c1_i32 = arith.constant 1 : i32
    %1 = arith.select %0, %c1_i32, %c2_i32 : i32
    %2 = arith.remsi %arg1, %1 : i32
    %c0_i32_0 = arith.constant 0 : i32
    %3 = arith.cmpi ne, %2, %c0_i32_0 : i32
    %c0_i32_1 = arith.constant 0 : i32
    %4 = arith.cmpi slt, %2, %c0_i32_1 : i32
    %c0_i32_2 = arith.constant 0 : i32
    %5 = arith.cmpi slt, %1, %c0_i32_2 : i32
    %6 = arith.xori %4, %5 : i1
    %7 = arith.andi %6, %3 : i1
    %8 = arith.addi %2, %1 : i32
    %9 = arith.select %7, %8, %2 : i32
    %c0_i32_3 = arith.constant 0 : i32
    %10 = arith.cmpi eq, %arg1, %c0_i32_3 : i32
    %11 = arith.extui %10 : i1 to i32
    %c0_i32_4 = arith.constant 0 : i32
    %12 = arith.cmpi ne, %11, %c0_i32_4 : i32
    scf.if %12 {
      %c256_i32_43 = arith.constant 256 : i32
      %67 = arith.muli %arg1, %c256_i32_43 : i32
      %68 = tpu.assume_multiple %67, 128 : i32
      %c0_i32_44 = arith.constant 0 : i32
      %69 = tpu.memref_slice %arg2[%arg0, %c0_i32_44, %68] : memref<2x16x384xf32, #tpu.memory_space<any>> -> memref<1x16x384xf32, #tpu.memory_space<any>>
      %70 = tpu.memref_squeeze %69 : memref<1x16x384xf32, #tpu.memory_space<any>> -> memref<16x384xf32, #tpu.memory_space<any>>
      %c0_i32_45 = arith.constant 0 : i32
      %c0_i32_46 = arith.constant 0 : i32
      %71 = tpu.memref_slice %arg6[%9, %c0_i32_45, %c0_i32_46] : memref<2x16x384xf32, #tpu.memory_space<vmem>> -> memref<1x16x384xf32, #tpu.memory_space<vmem>>
      %72 = tpu.memref_squeeze %71 : memref<1x16x384xf32, #tpu.memory_space<vmem>> -> memref<16x384xf32, #tpu.memory_space<vmem>>
      %73 = tpu.memref_slice %arg7[%9] : memref<2x!tpu.dma_semaphore, #tpu.memory_space<semaphore_mem>> -> memref<1x!tpu.dma_semaphore, #tpu.memory_space<semaphore_mem>>
      %74 = tpu.memref_squeeze %73 : memref<1x!tpu.dma_semaphore, #tpu.memory_space<semaphore_mem>> -> memref<!tpu.dma_semaphore, #tpu.memory_space<semaphore_mem>>
      tpu.enqueue_dma source(%70 : memref<16x384xf32, #tpu.memory_space<any>>) target(%72 : memref<16x384xf32, #tpu.memory_space<vmem>>) target_semaphore(%74 : memref<!tpu.dma_semaphore, #tpu.memory_space<semaphore_mem>>)
    } else {
    }
    %c256_i32 = arith.constant 256 : i32
    %13 = arith.muli %arg1, %c256_i32 : i32
    %14 = tpu.assume_multiple %13, 128 : i32
    %c0_i32_5 = arith.constant 0 : i32
    %15 = tpu.memref_slice %arg2[%arg0, %c0_i32_5, %14] : memref<2x16x384xf32, #tpu.memory_space<any>> -> memref<1x16x384xf32, #tpu.memory_space<any>>
    %16 = tpu.memref_squeeze %15 : memref<1x16x384xf32, #tpu.memory_space<any>> -> memref<16x384xf32, #tpu.memory_space<any>>
    %c0_i32_6 = arith.constant 0 : i32
    %c0_i32_7 = arith.constant 0 : i32
    %17 = tpu.memref_slice %arg6[%9, %c0_i32_6, %c0_i32_7] : memref<2x16x384xf32, #tpu.memory_space<vmem>> -> memref<1x16x384xf32, #tpu.memory_space<vmem>>
    %18 = tpu.memref_squeeze %17 : memref<1x16x384xf32, #tpu.memory_space<vmem>> -> memref<16x384xf32, #tpu.memory_space<vmem>>
    %19 = tpu.memref_slice %arg7[%9] : memref<2x!tpu.dma_semaphore, #tpu.memory_space<semaphore_mem>> -> memref<1x!tpu.dma_semaphore, #tpu.memory_space<semaphore_mem>>
    %20 = tpu.memref_squeeze %19 : memref<1x!tpu.dma_semaphore, #tpu.memory_space<semaphore_mem>> -> memref<!tpu.dma_semaphore, #tpu.memory_space<semaphore_mem>>
    tpu.wait_dma2 semaphore(%20 : memref<!tpu.dma_semaphore, #tpu.memory_space<semaphore_mem>>) src(%16 : memref<16x384xf32, #tpu.memory_space<any>>) dst(%18 : memref<16x384xf32, #tpu.memory_space<vmem>>)
    %c1_i32_8 = arith.constant 1 : i32
    %21 = arith.addi %arg1, %c1_i32_8 : i32
    %c1_i32_9 = arith.constant 1 : i32
    %22 = arith.cmpi slt, %21, %c1_i32_9 : i32
    %23 = arith.extui %22 : i1 to i32
    %c0_i32_10 = arith.constant 0 : i32
    %24 = arith.cmpi ne, %23, %c0_i32_10 : i32
    scf.if %24 {
      %c1_i32_43 = arith.constant 1 : i32
      %67 = arith.addi %arg1, %c1_i32_43 : i32
      %c1_i32_44 = arith.constant 1 : i32
      %68 = arith.subi %c1_i32_44, %9 : i32
      %c256_i32_45 = arith.constant 256 : i32
      %69 = arith.muli %67, %c256_i32_45 : i32
      %70 = tpu.assume_multiple %69, 128 : i32
      %c0_i32_46 = arith.constant 0 : i32
      %71 = tpu.memref_slice %arg2[%arg0, %c0_i32_46, %70] : memref<2x16x384xf32, #tpu.memory_space<any>> -> memref<1x16x384xf32, #tpu.memory_space<any>>
      %72 = tpu.memref_squeeze %71 : memref<1x16x384xf32, #tpu.memory_space<any>> -> memref<16x384xf32, #tpu.memory_space<any>>
      %c0_i32_47 = arith.constant 0 : i32
      %c0_i32_48 = arith.constant 0 : i32
      %73 = tpu.memref_slice %arg6[%68, %c0_i32_47, %c0_i32_48] : memref<2x16x384xf32, #tpu.memory_space<vmem>> -> memref<1x16x384xf32, #tpu.memory_space<vmem>>
      %74 = tpu.memref_squeeze %73 : memref<1x16x384xf32, #tpu.memory_space<vmem>> -> memref<16x384xf32, #tpu.memory_space<vmem>>
      %75 = tpu.memref_slice %arg7[%68] : memref<2x!tpu.dma_semaphore, #tpu.memory_space<semaphore_mem>> -> memref<1x!tpu.dma_semaphore, #tpu.memory_space<semaphore_mem>>
      %76 = tpu.memref_squeeze %75 : memref<1x!tpu.dma_semaphore, #tpu.memory_space<semaphore_mem>> -> memref<!tpu.dma_semaphore, #tpu.memory_space<semaphore_mem>>
      tpu.enqueue_dma source(%72 : memref<16x384xf32, #tpu.memory_space<any>>) target(%74 : memref<16x384xf32, #tpu.memory_space<vmem>>) target_semaphore(%76 : memref<!tpu.dma_semaphore, #tpu.memory_space<semaphore_mem>>)
    } else {
    }
    %c0 = arith.constant 0 : index
    %c0_11 = arith.constant 0 : index
    %c0_12 = arith.constant 0 : index
    %c0_13 = arith.constant 0 : index
    %25 = vector.load %arg3[%c0, %c0_11, %c0_12, %c0_13] : memref<1x4x16x16xf32, #tpu.memory_space<vmem>>, vector<1x1x16x16xf32>
    %26 = vector.shape_cast %25 : vector<1x1x16x16xf32> to vector<16x16xf32>
    %27 = arith.index_cast %9 : i32 to index
    %c0_14 = arith.constant 0 : index
    %c0_15 = arith.constant 0 : index
    %28 = vector.load %arg6[%27, %c0_14, %c0_15] : memref<2x16x384xf32, #tpu.memory_space<vmem>>, vector<1x16x256xf32>
    %29 = vector.shape_cast %28 : vector<1x16x256xf32> to vector<16x256xf32>
    %cst = arith.constant dense<0.000000e+00> : vector<16x256xf32>
    %30 = tpu.matmul %26, %29, %cst {dimension_numbers = #tpu.dot_dimension_numbers<[1], [0], [0], [1], [0, 0, 1, 1], [], []>} : vector<16x16xf32>, vector<16x256xf32>, vector<16x256xf32> -> vector<16x256xf32>
    %c0_16 = arith.constant 0 : index
    %c1 = arith.constant 1 : index
    %c0_17 = arith.constant 0 : index
    %c0_18 = arith.constant 0 : index
    %31 = vector.load %arg3[%c0_16, %c1, %c0_17, %c0_18] : memref<1x4x16x16xf32, #tpu.memory_space<vmem>>, vector<1x1x16x16xf32>
    %32 = vector.shape_cast %31 : vector<1x1x16x16xf32> to vector<16x16xf32>
    %33 = arith.index_cast %9 : i32 to index
    %c0_19 = arith.constant 0 : index
    %c1_20 = arith.constant 1 : index
    %34 = vector.load %arg6[%33, %c0_19, %c1_20] : memref<2x16x384xf32, #tpu.memory_space<vmem>>, vector<1x16x256xf32>
    %35 = vector.shape_cast %34 : vector<1x16x256xf32> to vector<16x256xf32>
    %cst_21 = arith.constant dense<0.000000e+00> : vector<16x256xf32>
    %36 = tpu.matmul %32, %35, %cst_21 {dimension_numbers = #tpu.dot_dimension_numbers<[1], [0], [0], [1], [0, 0, 1, 1], [], []>} : vector<16x16xf32>, vector<16x256xf32>, vector<16x256xf32> -> vector<16x256xf32>
    %37 = arith.addf %30, %36 : vector<16x256xf32>
    %c0_22 = arith.constant 0 : index
    %c2 = arith.constant 2 : index
    %c0_23 = arith.constant 0 : index
    %c0_24 = arith.constant 0 : index
    %38 = vector.load %arg3[%c0_22, %c2, %c0_23, %c0_24] : memref<1x4x16x16xf32, #tpu.memory_space<vmem>>, vector<1x1x16x16xf32>
    %39 = vector.shape_cast %38 : vector<1x1x16x16xf32> to vector<16x16xf32>
    %40 = arith.index_cast %9 : i32 to index
    %c0_25 = arith.constant 0 : index
    %c2_26 = arith.constant 2 : index
    %41 = vector.load %arg6[%40, %c0_25, %c2_26] : memref<2x16x384xf32, #tpu.memory_space<vmem>>, vector<1x16x256xf32>
    %42 = vector.shape_cast %41 : vector<1x16x256xf32> to vector<16x256xf32>
    %cst_27 = arith.constant dense<0.000000e+00> : vector<16x256xf32>
    %43 = tpu.matmul %39, %42, %cst_27 {dimension_numbers = #tpu.dot_dimension_numbers<[1], [0], [0], [1], [0, 0, 1, 1], [], []>} : vector<16x16xf32>, vector<16x256xf32>, vector<16x256xf32> -> vector<16x256xf32>
    %44 = arith.addf %37, %43 : vector<16x256xf32>
    %c0_28 = arith.constant 0 : index
    %c3 = arith.constant 3 : index
    %c0_29 = arith.constant 0 : index
    %c0_30 = arith.constant 0 : index
    %45 = vector.load %arg3[%c0_28, %c3, %c0_29, %c0_30] : memref<1x4x16x16xf32, #tpu.memory_space<vmem>>, vector<1x1x16x16xf32>
    %46 = vector.shape_cast %45 : vector<1x1x16x16xf32> to vector<16x16xf32>
    %47 = arith.index_cast %9 : i32 to index
    %c0_31 = arith.constant 0 : index
    %c3_32 = arith.constant 3 : index
    %48 = vector.load %arg6[%47, %c0_31, %c3_32] : memref<2x16x384xf32, #tpu.memory_space<vmem>>, vector<1x16x256xf32>
    %49 = vector.shape_cast %48 : vector<1x16x256xf32> to vector<16x256xf32>
    %cst_33 = arith.constant dense<0.000000e+00> : vector<16x256xf32>
    %50 = tpu.matmul %46, %49, %cst_33 {dimension_numbers = #tpu.dot_dimension_numbers<[1], [0], [0], [1], [0, 0, 1, 1], [], []>} : vector<16x16xf32>, vector<16x256xf32>, vector<16x256xf32> -> vector<16x256xf32>
    %51 = arith.addf %44, %50 : vector<16x256xf32>
    %c0_34 = arith.constant 0 : index
    %c0_35 = arith.constant 0 : index
    %c0_36 = arith.constant 0 : index
    %52 = vector.load %arg4[%c0_34, %c0_35, %c0_36] : memref<1x16x1xf32, #tpu.memory_space<vmem>>, vector<1x16x1xf32>
    %53 = vector.shape_cast %52 : vector<1x16x1xf32> to vector<16x1xf32>
    %54 = vector.broadcast %53 : vector<16x1xf32> to vector<16x256xf32>
    %55 = arith.addf %51, %54 : vector<16x256xf32>
    %cst_37 = arith.constant 5.000000e-01 : f32
    %56 = vector.broadcast %cst_37 : f32 to vector<16x256xf32>
    %57 = arith.mulf %56, %55 : vector<16x256xf32>
    %cst_38 = arith.constant 0.707106769 : f32
    %58 = vector.broadcast %cst_38 : f32 to vector<16x256xf32>
    %59 = arith.mulf %55, %58 : vector<16x256xf32>
    %60 = math.erf %59 : vector<16x256xf32>
    %cst_39 = arith.constant 1.000000e+00 : f32
    %61 = vector.broadcast %cst_39 : f32 to vector<16x256xf32>
    %62 = arith.addf %61, %60 : vector<16x256xf32>
    %63 = arith.mulf %57, %62 : vector<16x256xf32>
    %c0_40 = arith.constant 0 : index
    %c0_41 = arith.constant 0 : index
    %c0_42 = arith.constant 0 : index
    %64 = vector.load %arg5[%c0_40, %c0_41, %c0_42] : memref<1x16x256xf32, #tpu.memory_space<vmem>>, vector<1x16x256xf32>
    %65 = vector.shape_cast %64 : vector<1x16x256xf32> to vector<16x256xf32>
    %66 = vector.shape_cast %63 : vector<16x256xf32> to vector<1x16x256xf32>
    tpu.vector_store %arg5[%c0_40, %c0_41, %c0_42], %66 {strides = array<i32>} : memref<1x16x256xf32, #tpu.memory_space<vmem>>, vector<1x16x256xf32>,
    return
  }
  func.func @transform_1(%arg0: i32, %arg1: i32) -> (i32, i32, i32, i32) {
    %c0_i32 = arith.constant 0 : i32
    %c0_i32_0 = arith.constant 0 : i32
    %c0_i32_1 = arith.constant 0 : i32
    %c0_i32_2 = arith.constant 0 : i32
    return %arg0, %c0_i32, %c0_i32_0, %c0_i32_1 : i32, i32, i32, i32
  }
  func.func @transform_2(%arg0: i32, %arg1: i32) -> (i32, i32, i32) {
    %c0_i32 = arith.constant 0 : i32
    %c0_i32_0 = arith.constant 0 : i32
    %c0_i32_1 = arith.constant 0 : i32
    return %arg0, %c0_i32, %c0_i32_0 : i32, i32, i32
  }
  func.func @transform_3(%arg0: i32, %arg1: i32) -> (i32, i32, i32) {
    %c0_i32 = arith.constant 0 : i32
    %c0_i32_0 = arith.constant 0 : i32
    return %arg0, %c0_i32, %arg1 : i32, i32, i32
  }
}

</mosaic_0001>

<bundles_post_ra>
// kernel: tpu_custom_call.1
= control target key start
LH: loop header
LB: loop body
LE: loop exit
PB: predicated region body
PF: predicated region fallthrough
CT: control target
= control target key end

     0   :  { %s1514_s0 = inlined_call_operand.hbm [shape: f32[2,16,384], index: 0, kind: input, shape index: {}]   ;;  %s1515_s1 = inlined_call_operand.hbm [shape: f32[2,4,16,16], index: 1, kind: input, shape index: {}]   ;;  %s1516_s2 = inlined_call_operand.vmem [shape: f32[2,16,1], index: 2, kind: input, shape index: {}]   ;;  %s1517_s3 = inlined_call_operand.hbm [shape: f32[2,16,256], index: 3, kind: output, shape index: {}]  }
   0x1   :  { %1520 = sst [smem:[#allocation18_spill]] %s1515_s1 }
   0x2   :  { %8 = vsyncpa [#allocation5], 0 }
   0x3   :  { %10 = vsyncpa [#allocation5 + $0x1], 0 }
   0x4   :  { %11 = vsyncpa [#allocation6], 0 }
   0x5   :  { %13 = vsyncpa [#allocation6 + $0x1], 0  ;;  %s1250_s12 = smov 0   ;;  %s1252_s13 = smov 0  }
   0x6   :  { %s1254_s14 = smov 0   ;;  %s1256_s15 = smov 0  }
   0x7   :  { %s1258_s16 = smov 0   ;;  %s1260_s17 = smov 0  }
   0x8 LB: > { %s882_s18 = sadd.s32 4294967295, %s1216_s17   ;;  %s883_s19 = sadd.s32 4294967294, %s1216_s17   ;;  %s1216_s17 = sphi %s1260_s17, %s19_s17   ;;  %s1212_s16 = sphi %s1258_s16, %s1538_s16   ;;  %s1208_s15 = sphi %s1256_s15, %s1537_s15   ;;  %s1204_s14 = sphi %s1254_s14, %s1536_s14   ;;  %s1200_s13 = sphi %s1252_s13, %s1535_s13   ;;  %s1196_s12 = sphi %s1250_s12, %s1534_s12  }
   0x9   : > { %s31_s20 = sadd.s32 1, %s1212_s16  ;;  %s38_s21 = sadd.s32 1, %s1204_s14 }
   0xa   : > { %p33_p0 = scmp.ge.s32.totalorder %s31_s20, 2  ;;  %p45_p1 = scmp.ne.s32.totalorder %s1204_s14, %s1200_s13 }
   0xb   : > { %p46_p2 = scmp.eq.s32.totalorder %s1216_s17, 0  ;;  %p51_p3 = scmp.ne.s32.totalorder %s1200_s13, %s1196_s12 }
   0xc   : > { %s1540_s20 = smov (%p33_p0, %s31_s20), 0  ;;  %p52_p5 = scmp.eq.s32.totalorder %s882_s18, 0 }
   0xd   : > { %1521 = sst [smem:[#allocation17_spill]] %s1540_s20  ;;  %p1291_p4 = por %p46_p2, %p45_p1 }
   0xe   : > { %s35_s23 = ssub.s32 %s1212_s16, %s1540_s20  ;;  %p103_p6 = scmp.eq.s32.totalorder %s882_s18, 1 }
   0xf   : > { %p36_p7 = scmp.eq.s32.totalorder %s35_s23, 0  ;;  %p1297_p8 = por %p52_p5, %p51_p3 }
  0x10   : > { %p1301_p9 = por %p103_p6, %p45_p1  ;;  %p109_p10 = scmp.eq.s32.totalorder %s883_s19, 1 }
  0x11   : > { %s1306_s26 = scalar_select %p36_p7, %s1204_s14, %s38_s21  }
  0x12   : > { %s1524_s25 = scalar_select %p1301_p9, 1, 0 }
  0x13   : > { %p1308_p11 = por %p109_p10, %p51_p3  ;;  %p963_p13 = scmp.lt.s32.totalorder %s1216_s17, 2 }
  0x14   : > { %s129_s28 = sand.u32 1, %s1204_s14   ;;  %s917_s30 = sshll.u32 %s1212_s16, 10 }
  0x15   : > { %s1525_s27 = scalar_select %p1308_p11, 1, 0 }
  0x16   : > { %s886_s29 = sshll.u32 %s129_s28, 6  ;;  %s1526_s1 = sld [smem:[#allocation18_spill]] }
  0x17   : > { %s133_s7 = scalar_lea.vmem [#allocation4], %s886_s29  ;;  %p1325_p0 = pnand %p963_p13, %p1291_p4 }
  0x18   : > { %s140_s8 = sshll.u32 %s133_s7, 4  ;;  %s1330_s10 = scalar_lea.sflag [#allocation5], %s129_s28  ;;  %s1321_s8 = int_to_ptr.vmem [resolvable:$true] %s140_s8 }
  0x19   : > { %p1080_p3 = pneg %p1325_p0 }
  0x1c   : > { %s1319_s6 = scalar_lea.hbm %s1526_s1, %s917_s30  ;;  %s1083_s21 = scalar_lea.hbm %s1526_s1, 2048 }
  0x1d   : > { %s1078_s11 = scalar_lea.hbm %s1319_s6, 1024  ;;  %p1084_p4 = scmp.lt.u32.totalorder %s1319_s6, %s1526_s1 }
  0x1e   : > { %p1079_p2 = scmp.ne.s32.totalorder %s1319_s6, %s1078_s11  ;;  %p1085_p7 = scmp.lt.u32.totalorder %s1083_s21, %s1078_s11 }
  0x1f   : > { %p1087_p13 = scmp.lt.u32.totalorder %s1078_s11, %s1319_s6 }
  0x20   : > { %p1081_p5 = pnand %p1080_p3, %p1079_p2  ;;  %p1086_p10 = por %p1085_p7, %p1084_p4 }
  0x22   : > { %p1082_p6 = pneg %p1081_p5  ;;  %p1088_p12 = por %p1087_p13, %p1086_p10 }
  0x24   : > { %p1089_p1 = pnand %p1088_p12, %p1082_p6 }
  0x26   : > { %1092 = shalt.err (!%p1089_p1)
}
  0x27   : > { %s1093_s28 = scalar_lea.vmem %s1321_s8, 1024  ;;  %s1218_s29 = smov [#allocation4]  }
  0x28   : > { %p1094_p2 = scmp.ne.s32.totalorder %s1321_s8, %s1093_s28  ;;  %s1098_s30 = sshll.u32 %s1218_s29, 4  ;;  %s1099_s30 = int_to_ptr.vmem [resolvable:$false] %s1098_s30 }
  0x29   : > { %s1100_s4 = scalar_lea.vmem %s1099_s30, 2048  ;;  %p1101_p9 = scmp.lt.s32.totalorder %s1321_s8, %s1099_s30 }
  0x2a   : > { %p1096_p5 = pnand %p1094_p2, %p1080_p3  ;;  %p1102_p4 = scmp.lt.s32.totalorder %s1100_s4, %s1093_s28 }
  0x2c   : > { %p1097_p11 = pneg %p1096_p5  ;;  %p1103_p7 = por %p1102_p4, %p1101_p9 }
  0x2e   : > { %p1104_p10 = pnand %p1103_p7, %p1097_p11 }
  0x30   : > { %1107 = shalt.err (!%p1104_p10)
}
  0x31   : > { %s1219_s5 = smov 128   ;;  %s1220_s7 = smov 8  }
  0x32   : > { %958 = dma.hbm_to_vmem [thread:$0]  (!%p1325_p0), %s1319_s6, 1024, %s1321_s8, %s1330_s10, %s1219_s5, %s1219_s5, %s1220_s7  }
  0x33   : > { %p156_p12 = scmp.lt.s32.totalorder %s1216_s17, 3  ;;  %p1528_p1 = scmp.ge.s32.totalorder %s1216_s17, 1 }
  0x35   : > { %p157_p3 = pnand %p1528_p1, %p156_p12 }
  0x36   : > { %s1362_s11 = sand.u32 (!%p157_p3), 1, %s1200_s13  }
  0x37   : > { %160 = sbr.rel (%p157_p3) target bundleno = 486 (0x1e6), region = 28  ;;  %s890_s18 = sshll.u32 (!%p157_p3), %s1362_s11, 6 }
  0x38   : > { %s163_s19 = scalar_lea.sflag (!%p157_p3), [#allocation5], %s1362_s11  ;;  %s1366_s21 = scalar_lea.vmem (!%p157_p3), [#allocation4], %s890_s18 }
  0x3e   : > { %1185 = dma.done.wait (%p1297_p8), %s163_s19, 1024  }
  0x3f   : > { %1187 = vsyncadd (%p1297_p8), %s163_s19, 4294966272  ;;  %p192_p9 = scmp.lt.s32.totalorder %s1208_s15, 1  ;;  %s919_s8 = smul.u32 768, %s1208_s15 }
  0x40   : > { %s1221_s29 = smov [#allocation2]   ;;  %s1110_s6 = scalar_lea.hbm %s1514_s0, 1536 }
  0x41   : > { %s193_s9 = scalar_select %p192_p9, %s1208_s15, 1 }
  0x42   : > { %s220_s23 = scalar_lea.hbm %s1514_s0, %s919_s8  ;;  %s232_s30 = sshll.u32 %s1221_s29, 4  ;;  %s233_s30 = int_to_ptr.vmem [resolvable:$true] %s232_s30 }
  0x43   : > { %s918_s28 = sshll.u32 %s193_s9, 4  ;;  %s1108_s7 = scalar_lea.hbm %s220_s23, 768 }
  0x44   : > { %s1382_s24 = scalar_lea.vmem %s1516_s2, %s918_s28  ;;  %p1109_p8 = scmp.ne.s32.totalorder %s220_s23, %s1108_s7 }
  0x45   : > { %p1111_p11 = scmp.lt.u32.totalorder %s220_s23, %s1514_s0  ;;  %p1112_p0 = scmp.lt.u32.totalorder %s1110_s6, %s1108_s7 }
  0x46   : > { %p1114_p13 = scmp.lt.u32.totalorder %s1108_s7, %s220_s23 }
  0x47   : > { %p1113_p6 = por %p1112_p0, %p1111_p11 }
  0x49   : > { %p1115_p2 = por %p1114_p13, %p1113_p6 }
  0x4b   : > { %p1116_p5 = pnand %p1115_p2, %p1109_p8 }
  0x4d   : > { %1119 = shalt.err (!%p1116_p5)  }
  0x4e   : > { %s1120_s8 = scalar_lea.vmem %s233_s30, 768  ;;  %s1124_s9 = scalar_lea.vmem %s233_s30, 1536 }
  0x4f   : > { %p1121_p4 = scmp.ne.s32.totalorder %s233_s30, %s1120_s8  ;;  %p1125_p7 = scmp.lt.s32.totalorder %s233_s30, %s233_s30 }
  0x50   : > { %p1126_p10 = scmp.lt.s32.totalorder %s1124_s9, %s1120_s8 }
  0x52   : > { %p1127_p12 = por %p1126_p10, %p1125_p7 }
  0x54   : > { %p1128_p1 = pnand %p1127_p12, %p1121_p4 }
  0x56   : > { %1131 = shalt.err (!%p1128_p1)  }
  0x57   : > { %235 = dma.hbm_to_vmem [thread:$0]  %s220_s23, 768, %s233_s30, [#allocation3] }
  0x58   : > { %s1529_s10 = sshll.u32 %s1362_s11, 5 }
  0x59   : > { %s1392_s22 = scalar_lea.vmem [#allocation7], %s1529_s10 }
  0x5a   : > { %1188 = dma.done.wait [#allocation3], 768 }
  0x5b   : > { %1189 = vsyncadd [#allocation3], 4294966528  ;;  %v1394_v0 = vld [vmem:[#allocation2 + $0x8] sm:$0xff]  ;;  %v282_v1 = vld [vmem:[#allocation2 + $0x10] sm:$0xff]  ;;  %s1222_s1 = smov 126   ;;  %s1223_s20 = smov 127  }
  0x5c   : > { %v1396_v2 = vld [vmem:[#allocation2 + $0x20] sm:$0xff]  ;;  %v1033_v3 = vpack.i.bf16 %v282_v1, %v1394_v0  ;;  %v283_v4 = vld [vmem:[#allocation2 + $0x28] sm:$0xff]  ;;  %v1402_v7 = vld [vmem:[#allocation2 + $0x18] sm:$0xff]  ;;  %v1224_v8 = vmov 0.0   ;;  %s1225_s6 = smov 125   ;;  %v1226_v13 = vmov 0  }
  0x5d   : > { %v1038_v5 = vpack.i.bf16 %v283_v4, %v1396_v2  ;;  %v1400_v6 = vld [vmem:[#allocation2] sm:$0xff]  ;;  %382 = vmatprep.mubr.f32.mxu1 %v1224_v8  ;;  %572 = vmatprep.mubr.f32.mxu0 %v1224_v8  ;;  %v927_v10 = vpack.c.bf16 %v1396_v2, %v1394_v0  ;;  %v701_v14 = vld [vmem:[%s1382_s24 + $0x8] sm:$0xff]  ;;  %vm302_vm0 = vcmask 1039360   ;;  %vm493_vm1 = vcmask 1031168   ;;  %v896_v51 = vld [vmem:[%s1366_s21 + $0x10] sm:$0xff]  ;;  %s756_s23 = sshll.u32 %s1392_s22, 4  ;;  %s1463_s23 = int_to_ptr.vmem [resolvable:$true] %s756_s23 }
  0x5e   : > { %1034 = vrot.lane.b32.xlu1 %v1033_v3, %s1222_s1  ;;  %1024 = vrot.lane.b32.xlu0 %v1033_v3, %s1223_s20  ;;  %v1048_v9 = vpack.i.bf16 %v1402_v7, %v1400_v6  ;;  %v929_v11 = vpack.c.bf16 %v1402_v7, %v1400_v6  ;;  %v700_v12 = vld [vmem:[%s1382_s24] sm:$0xff]  ;;  %vm604_vm2 = vcmask 1022976   ;;  %vm311_vm3 = vcmask 130048   ;;  %v897_v59 = vld [vmem:[%s1366_s21 + $0x18] sm:$0xff]  ;;  %s1132_s4 = scalar_lea.vmem %s1463_s23, 512  ;;  %p1530_p9 = scmp.ne.s32.totalorder %s1524_s25, 0 }
  0x5f   : > { %1068 = vset.pattern.permute.xlu1 %v1226_v13  ;;  %1069 = vset.pattern.permute.xlu0 %v1226_v13  ;;  %v902_v52 = vld [vmem:[%s1366_s21 + $0x20] sm:$0xff]  ;;  %v903_v60 = vld [vmem:[%s1366_s21 + $0x28] sm:$0xff]  ;;  %v906_v1 = vld [vmem:[%s1366_s21 + $0x30] sm:$0xff]  ;;  %p1133_p3 = scmp.ne.s32.totalorder %s1463_s23, %s1132_s4  ;;  %s1227_s5 = smov [#allocation7]  }
  0x60   : > { %v273_v0 = vld [vmem:[%s1366_s21] sm:$0xff]  ;;  %v274_v2 = vld [vmem:[%s1366_s21 + $0x8] sm:$0xff]  ;;  %s1136_s24 = sshll.u32 %s1227_s5, 4  ;;  %s1137_s24 = int_to_ptr.vmem [resolvable:$false] %s1136_s24 }
  0x61   : > { %p1134_p8 = pnand %p1133_p3, %p1530_p9  ;;  %s1138_s7 = scalar_lea.vmem %s1137_s24, 1024 }
  0x62   : > { %1039 = vrot.lane.b32.xlu1 %v1038_v5, %s1222_s1  ;;  %1029 = vrot.lane.b32.xlu0 %v1038_v5, %s1223_s20  ;;  %p1139_p0 = scmp.lt.s32.totalorder %s1463_s23, %s1137_s24  ;;  %p1140_p6 = scmp.lt.s32.totalorder %s1138_s7, %s1132_s4 }
  0x63   : > { %p1135_p11 = pneg %p1134_p8 }
  0x64   : > { %p1141_p13 = por %p1140_p6, %p1139_p0 }
  0x66   : > { %1049 = vrot.lane.b32.xlu1 %v1048_v9, %s1222_s1  ;;  %1044 = vrot.lane.b32.xlu0 %v1048_v9, %s1223_s20  ;;  %p1142_p2 = pnand %p1141_p13, %p1135_p11 }
  0x6a   : > { %1059 = vrot.lane.b32.xlu1 %v1038_v5, %s1225_s6  ;;  %1054 = vrot.lane.b32.xlu0 %v1033_v3, %s1225_s6  ;;  %v907_v3 = vld [vmem:[%s1366_s21 + $0x38] sm:$0xff]  ;;  %s922_s21 = sshll.u32 %s1208_s15, 9  ;;  %s741_s15 = scalar_lea.sflag [#allocation6], %s1362_s11 }
  0x6b   : > { %s1461_s30 = scalar_lea.hbm %s1517_s3, %s922_s21 }
  0x6e   : > { %1064 = vrot.lane.b32.xlu0 %v1048_v9, %s1225_s6  ;;  %704 = vperm.xlu1 %1068, %v700_v12  }
  0x72   : > { %709 = vperm.xlu0 %1069, %v701_v14  }
  0xd0   : > { %v1035_v15 = vpop.permute.xlu1 %1034  ;;  %v1025_v16 = vpop.permute.xlu0 %1024 }
  0xd1   : > { %v1037_v17 = vunpack.i.h.bf16 %v1035_v15  ;;  %v1036_v18 = vunpack.i.l.bf16 %v1035_v15  ;;  %v1027_v19 = vunpack.i.h.bf16 %v1025_v16  ;;  %v1026_v20 = vunpack.i.l.bf16 %v1025_v16 }
  0xd3   : > { %v304_v27 = vsel %vm302_vm0, %v1026_v20, %v1027_v19  ;;  %v495_v29 = vsel %vm493_vm1, %v1036_v18, %v1037_v17 }
  0xd4   : > { %v1040_v21 = vpop.permute.xlu1 %1039  ;;  %v1030_v22 = vpop.permute.xlu0 %1029 }
  0xd5   : > { %v1042_v23 = vunpack.i.h.bf16 %v1040_v21  ;;  %v1041_v24 = vunpack.i.l.bf16 %v1040_v21  ;;  %v1032_v25 = vunpack.i.h.bf16 %v1030_v22  ;;  %v1031_v26 = vunpack.i.l.bf16 %v1030_v22 }
  0xd7   : > { %v306_v28 = vsel %vm302_vm0, %v1031_v26, %v1032_v25  ;;  %v497_v30 = vsel %vm493_vm1, %v1041_v24, %v1042_v23 }
  0xd8   : > { %v1050_v31 = vpop.permute.xlu1 %1049  ;;  %v1045_v32 = vpop.permute.xlu0 %1044  ;;  %v923_v33 = vpack.c.bf16 %v306_v28, %v304_v27  ;;  %v931_v34 = vpack.c.bf16 %v497_v30, %v495_v29 }
  0xd9   : > { %v1052_v35 = vunpack.i.h.bf16 %v1050_v31  ;;  %v1051_v36 = vunpack.i.l.bf16 %v1050_v31  ;;  %v1047_v37 = vunpack.i.h.bf16 %v1045_v32  ;;  %v1046_v38 = vunpack.i.l.bf16 %v1045_v32 }
  0xda   : > { %924 = vmatprep.subr.bf16.mxu1 %v923_v33  ;;  %932 = vmatprep.subr.bf16.mxu0 %v931_v34 }
  0xdb   : > { %v303_v39 = vsel %vm302_vm0, %v1046_v38, %v1026_v20  ;;  %v305_v40 = vsel %vm302_vm0, %v1047_v37, %v1031_v26  ;;  %v494_v41 = vsel %vm493_vm1, %v1051_v36, %v1036_v18  ;;  %v496_v42 = vsel %vm493_vm1, %v1052_v35, %v1041_v24 }
  0xdc   : > { %v1060_v43 = vpop.permute.xlu1 %1059  ;;  %v1055_v44 = vpop.permute.xlu0 %1054  ;;  %v925_v45 = vpack.c.bf16 %v305_v40, %v303_v39  ;;  %v933_v46 = vpack.c.bf16 %v496_v42, %v494_v41 }
  0xdd   : > { %v1062_v47 = vunpack.i.h.bf16 %v1060_v43  ;;  %v1061_v48 = vunpack.i.l.bf16 %v1060_v43  ;;  %v1057_v49 = vunpack.i.h.bf16 %v1055_v44  ;;  %v1056_v50 = vunpack.i.l.bf16 %v1055_v44 }
  0xde   : > { %926 = vmatpush1.bf16.msra.mxu1 %v925_v45  ;;  %934 = vmatpush1.bf16.msra.mxu0 %v933_v46 }
  0xdf   : > { %v606_v53 = vsel %vm604_vm2, %v1056_v50, %v1057_v49  ;;  %v608_v54 = vsel %vm604_vm2, %v1061_v48, %v1062_v47  ;;  %928 = vmatprep.subr.bf16.mxu1 %v927_v10 }
  0xe0   : > { %v1065_v55 = vpop.permute.xlu0 %1064  ;;  %v935_v56 = vpack.c.bf16 %v608_v54, %v606_v53 }
  0xe1   : > { %v1067_v57 = vunpack.i.h.bf16 %v1065_v55  ;;  %v1066_v58 = vunpack.i.l.bf16 %v1065_v55  ;;  %898 = vmatmul.mubr.msk.f32.vlgmr.msra.gmra.mrb[0].mxu1 %vm311_vm3, %v896_v51  ;;  %904 = vmatmul.mubr.msk.f32.vlgmr.msra.gmra.mrb[0].mxu0 %vm311_vm3, %v902_v52 }
  0xe2   : > { %936 = vmatprep.subr.bf16.mxu0 %v935_v56  ;;  %388 = vmatprep.mubr.f32.mxu1 %v1224_v8 }
  0xe3   : > { %v607_v61 = vsel %vm604_vm2, %v1067_v57, %v1061_v48  ;;  %v605_v62 = vsel %vm604_vm2, %v1066_v58, %v1056_v50  ;;  %578 = vmatprep.mubr.f32.mxu0 %v1224_v8  ;;  %930 = vmatpush1.bf16.msra.mxu1 %v929_v11 }
  0xe4   : > { %v937_v63 = vpack.c.bf16 %v607_v61, %v605_v62 }
  0xe5   : > { %899 = vmatmul.mubr.msk.f32.gmra.mrb[2].mxu1 %vm311_vm3, %v897_v59  ;;  %905 = vmatmul.mubr.msk.f32.gmra.mrb[2].mxu0 %vm311_vm3, %v903_v60 }
  0xe6   : > { %938 = vmatpush1.bf16.msra.mxu0 %v937_v63  ;;  %465 = vmatprep.mubr.f32.mxu1 %v1224_v8 }
  0xe7   : > { %683 = vmatprep.mubr.f32.mxu0 %v1224_v8 }
  0xe9   : > { %900 = vmatmul.mubr.msk.f32.vlgmr.msra.gmra.mrb[0].mxu1 %vm311_vm3, %v273_v0  ;;  %908 = vmatmul.mubr.msk.f32.vlgmr.msra.gmra.mrb[0].mxu0 %vm311_vm3, %v906_v1 }
  0xea   : > { %471 = vmatprep.mubr.f32.mxu1 %v1224_v8  ;;  %689 = vmatprep.mubr.f32.mxu0 %v1224_v8 }
  0xed   : > { %901 = vmatmul.mubr.msk.f32.gmra.mrb[2].mxu1 %vm311_vm3, %v274_v2  ;;  %909 = vmatmul.mubr.msk.f32.gmra.mrb[2].mxu0 %vm311_vm3, %v907_v3  ;;  %v705_v4 = vpop.permute.xlu1 %704 }
  0xf1   : > { %v710_v13 = vpop.permute.xlu0 %709 }
 0x1bc   : > { %v467_v5 = vpop.f32.mrb[0].mxu1  ;;  %v685_v6 = vpop.f32.mrb[0].mxu0 }
 0x1bd   : > { %v939_v7 = vadd.f32 %v685_v6, %v467_v5  ;;  %v469_v9 = vpop.f32.mrb[1].mxu1  ;;  %v687_v10 = vpop.f32.mrb[1].mxu0 }
 0x1be   : > { %v940_v11 = vadd.f32 %v687_v10, %v469_v9 }
 0x1bf   : > { %v712_v12 = vadd.f32 %v939_v7, %v705_v4 }
 0x1c0   : > { %v713_v14 = vadd.f32 %v940_v11, %v705_v4  ;;  %v473_v15 = vpop.f32.mrb[2].mxu1  ;;  %v691_v16 = vpop.f32.mrb[2].mxu0 }
 0x1c1   : > { %v720_v17 = vmul.f32 0.70710677, %v712_v12  ;;  %v941_v8 = vadd.f32 %v691_v16, %v473_v15  ;;  %v475_v18 = vpop.f32.mrb[3].mxu1  ;;  %v693_v19 = vpop.f32.mrb[3].mxu0  ;;  %v716_v28 = vmul.f32 0.5, %v712_v12 }
 0x1c2   : > { %v721_v20 = vmul.f32 0.70710677, %v713_v14  ;;  %v942_v21 = vadd.f32 %v693_v19, %v475_v18  ;;  %v717_v30 = vmul.f32 0.5, %v713_v14 }
 0x1c3   : > { %1070 = verf.f32 %v720_v17  ;;  %v714_v22 = vadd.f32 %v941_v8, %v710_v13 }
 0x1c4   : > { %1072 = verf.f32 %v721_v20  ;;  %v715_v23 = vadd.f32 %v942_v21, %v710_v13 }
 0x1c5   : > { %v722_v24 = vmul.f32 0.70710677, %v714_v22  ;;  %v718_v36 = vmul.f32 0.5, %v714_v22 }
 0x1c6   : > { %v723_v25 = vmul.f32 0.70710677, %v715_v23  ;;  %v719_v38 = vmul.f32 0.5, %v715_v23 }
 0x1c7   : > { %1074 = verf.f32 %v722_v24 }
 0x1c8   : > { %1076 = verf.f32 %v723_v25 }
 0x1cd   : > { %v1071_v26 = vpop.eup %1070 }
 0x1ce   : > { %v1073_v27 = vpop.eup %1072  ;;  %v728_v29 = vadd.f32 1.0, %v1071_v26 }
 0x1cf   : > { %v729_v31 = vadd.f32 1.0, %v1073_v27 }
 0x1d0   : > { %v732_v32 = vmul.f32 %v728_v29, %v716_v28 }
 0x1d1   : > { %v1075_v33 = vpop.eup %1074  ;;  %v733_v34 = vmul.f32 %v729_v31, %v717_v30 }
 0x1d2   : > { %v1077_v35 = vpop.eup %1076  ;;  %736 = vst [vmem:[%s1392_s22] sm:$0xff] %v732_v32  ;;  %v730_v37 = vadd.f32 1.0, %v1075_v33 }
 0x1d3   : > { %737 = vst [vmem:[%s1392_s22 + $0x8] sm:$0xff] %v733_v34  ;;  %v731_v39 = vadd.f32 1.0, %v1077_v35 }
 0x1d4   : > { %v734_v40 = vmul.f32 %v730_v37, %v718_v36 }
 0x1d5   : > { %v735_v41 = vmul.f32 %v731_v39, %v719_v38 }
 0x1d6   : > { %738 = vst [vmem:[%s1392_s22 + $0x10] sm:$0xff] %v734_v40 }
 0x1d7   : > { %739 = vst [vmem:[%s1392_s22 + $0x18] sm:$0xff] %v735_v41 }
 0x1d8   : > { %1145 = shalt.err (!%p1142_p2)
}
 0x1d9   : > { %s1146_s18 = scalar_lea.hbm %s1461_s30, 512  ;;  %s1150_s9 = scalar_lea.hbm %s1517_s3, 1024 }
 0x1da   : > { %p1147_p5 = scmp.ne.s32.totalorder %s1461_s30, %s1146_s18  ;;  %p1151_p10 = scmp.lt.u32.totalorder %s1461_s30, %s1517_s3 }
 0x1db   : > { %p1152_p12 = scmp.lt.u32.totalorder %s1150_s9, %s1146_s18  ;;  %p1154_p3 = scmp.lt.u32.totalorder %s1146_s18, %s1461_s30 }
 0x1dc   : > { %p1148_p4 = pnand %p1147_p5, %p1530_p9 }
 0x1dd   : > { %p1153_p1 = por %p1152_p12, %p1151_p10 }
 0x1de   : > { %p1149_p7 = pneg %p1148_p4 }
 0x1df   : > { %p1155_p8 = por %p1154_p3, %p1153_p1 }
 0x1e1   : > { %p1156_p11 = pnand %p1155_p8, %p1149_p7 }
 0x1e3   : > { %1159 = shalt.err (!%p1156_p11)
}
 0x1e4   : > { %s1228_s1 = smov 256   ;;  %s1229_s20 = smov 16  }
 0x1e5   : > { %953 = dma.vmem_to_hbm [thread:$0]  (%p1530_p9), %s1463_s23, 512, %s1461_s30, %s741_s15, %s1228_s1, %s1228_s1, %s1229_s20  }
 0x1e6 PF: > { %s771_s6 = sand.u32 1, %s1196_s12   ;;  %p1531_p0 = scmp.ne.s32.totalorder %s1525_s27, 0 }
 0x1e7   : > { %p1532_p6 = scmp.ge.s32.totalorder %s1216_s17, 2  ;;  %s772_s21 = scalar_lea.sflag [#allocation6], %s771_s6 }
 0x1e9   : > { %p960_p13 = pnand %p1532_p6, %p1531_p0 }
 0x1eb   : > { %1191 = dma.done.wait (!%p960_p13), %s772_s21, 512  }
 0x1ec   : > { %1193 = vsyncadd (!%p960_p13), %s772_s21, 4294966784  ;;  %s19_s17 = sadd.s32 1, %s1216_s17   ;;  %s1533_s25 = sld [smem:[#allocation17_spill]] }
 0x1ed   : > { %p16_p2 = scmp.ge.s32.totalorder %s19_s17, 4   ;;  %s1534_s12 = smov %s1200_s13 }
 0x1ee   : > { %s1535_s13 = smov %s1204_s14  ;;  %s1536_s14 = smov %s1306_s26 }
 0x1ef   : > { %s1537_s15 = smov %s1212_s16  ;;  %18 = sbr.rel (!%p16_p2) target bundleno = 8 (0x8), region = 104 }
 0x1f2   : > { %s1538_s16 = smov %s1533_s25 }
 0x1f6   :  { %777 = vsyncpa [#allocation5], 1 }
 0x1f7   :  { %779 = vsyncpa [#allocation5 + $0x1], 1 }
 0x1f8   :  { %780 = vsyncpa [#allocation6], 1 }
 0x1f9   :  { %782 = vsyncpa [#allocation6 + $0x1], 1 }
 0x1fa   :  { %783 = vsyncmov [#allocation3] }
 0x1fd   :  { %s784_s27 = vpop.sfrf %783 }
 0x1fe   :  { %p915_p9 = scmp.ne.s32.totalorder %s784_s27, 0 }
 0x200   :  { %788 = shalt.err (%p915_p9)  }
 0x201   :  { %790 = vsyncmov [#allocation3 + $0x1] }
 0x204   :  { %s791_s11 = vpop.sfrf %790 }
 0x205   :  { %p916_p5 = scmp.ne.s32.totalorder %s791_s11, 0 }
 0x207   :  { %795 = shalt.err (%p916_p5)  }

</bundles_post_ra>
